<compile_context>
chip_gen: v7x
topology: tpu7x:2x2x1
jax: 0.10.0
libtpu: 0.0.40
codegen_flags: <defaults>
</compile_context>

<pallas_src>
import jax
import jax.numpy as jnp
from jax import lax
from jax.experimental import pallas as pl
from jax.experimental.pallas import tpu as pltpu


LANES = 128
SUBLANES = 8
# Minimal row granularity: 32 satisfies the (8,128)/(16,128)/(32,128)
# min-tile constraint for any label dtype (f32 / bf16 / int8 / bool).
MIN_ROW_GRANULE = 32
# Strip-mine chunk: (256,128) f32 intermediates = 32 vregs live -> well
# under the 64-vreg budget.
CHUNK_ROWS = 256
# Largest row tile streamed per grid step: 4096x128 f32 = 2 MiB per input
# per pipeline buffer (~8 MiB double-buffered with f32 labels) -> fits the
# default scoped VMEM on v5e/v6e/v7x with plenty of headroom.
MAX_TILE_ROWS = 4096


def _round_up(x: int, m: int) -> int:
    return ((x + m - 1) // m) * m


def _pow_weight(one_m, gamma: float):
    """(1 - p_t) ** gamma, avoiding EUP transcendentals whenever possible."""
    if gamma == 0.0:
        return jnp.ones_like(one_m)
    if float(gamma).is_integer() and 0.0 < gamma <= 16.0:
        # Exponentiation by squaring: pure VPU multiplies.
        e = int(gamma)
        w = None
        base = one_m
        while e > 0:
            if e & 1:
                w = base if w is None else w * base
            e >>= 1
            if e:
                base = base * base
        return w
    if (2.0 * gamma).is_integer() and gamma > 0.0:
        # Half-integer gamma: one sqrt + integer part via plain multiplies.
        w = jnp.sqrt(one_m)
        for _ in range(int(gamma - 0.5)):
            w = w * one_m
        return w
    # Generic gamma: exp(gamma * log(x)), with 0 ** gamma -> 0.
    # TODO(synk): gamma < 0 with p_t == 1 (torch gives 0 ** negative == inf)
    # is not reproduced; supported range is gamma >= 0.
    safe = jnp.maximum(one_m, jnp.float32(1e-38))
    return jnp.where(one_m > 0.0,
                     jnp.exp(jnp.float32(gamma) * jnp.log(safe)),
                     jnp.float32(0.0))


def _make_focal_loss_kernel(gamma: float, tile_rows: int, chunk_rows: int):
    gamma = float(gamma)
    n_chunks = tile_rows // chunk_rows

    def kernel(probs_ref, actual_ref, out_ref, acc_ref):
        k = pl.program_id(1)

        @pl.when(k == 0)
        def _():
            acc_ref[...] = jnp.zeros_like(acc_ref)

        eps = jnp.float32(1e-8)

        def chunk_body(c, acc):
            r0 = pl.multiple_of(c * chunk_rows, chunk_rows)
            p = probs_ref[pl.ds(r0, chunk_rows), :].astype(jnp.float32)
            a = actual_ref[pl.ds(r0, chunk_rows), :]
            # Reference semantics: positive branch iff actual == 1
            # (labels outside {0,1} take the 1 - p branch, as in torch).
            is_pos = a == 1
            p_t = jnp.where(is_pos, p, 1.0 - p)
            p_t = jnp.clip(p_t, eps, 1.0)
            one_m = 1.0 - p_t
            w = _pow_weight(one_m, gamma)
            loss = -w * jnp.log(p_t)
            # Sublane-aligned fold (pure VPU adds); accumulator is one vreg.
            return acc + loss.reshape(-1, SUBLANES, LANES).sum(axis=0)

        partial = lax.fori_loop(
            0, n_chunks, chunk_body,
            jnp.zeros((SUBLANES, LANES), jnp.float32),
            unroll=True)
        acc_ref[...] += partial

        @pl.when(k == pl.num_programs(1) - 1)
        def _():
            out_ref[...] = acc_ref[...].reshape((1, SUBLANES, LANES))

    return kernel


def focal_loss(probs: jax.Array, actual: jax.Array, gamma: float = 1.0) -> jax.Array:
    """Pallas TPU focal loss; returns a scalar float32 (mean over all elements)."""
    assert probs.shape == actual.shape
    total = probs.size

    rows = pl.cdiv(total, LANES)
    if rows >= MAX_TILE_ROWS:
        tile_rows = MAX_TILE_ROWS
        chunk_rows = CHUNK_ROWS
    elif rows > CHUNK_ROWS:
        tile_rows = _round_up(rows, CHUNK_ROWS)
        chunk_rows = CHUNK_ROWS
    else:
        tile_rows = _round_up(rows, MIN_ROW_GRANULE)
        chunk_rows = tile_rows

    num_tiles = pl.cdiv(rows, tile_rows)
    # v7x: always give both TensorCores work when there is >1 tile (pad to
    # an even tile count instead of falling back to a single shard).
    if num_tiles >= 2 and num_tiles % 2 == 1:
        num_tiles += 1
    outer = 2 if num_tiles >= 2 else 1
    inner = num_tiles // outer

    padded_rows = num_tiles * tile_rows
    pad = padded_rows * LANES - total

    p_flat = probs.reshape(-1)
    a_flat = actual.reshape(-1)  # native dtype; compared against 1 in-kernel
    if pad:
        # probs=0, actual=0 padding contributes exactly 0 to the loss sum.
        p_flat = jnp.pad(p_flat, (0, pad))
        a_flat = jnp.pad(a_flat, (0, pad))
    p2 = p_flat.reshape(padded_rows, LANES)
    a2 = a_flat.reshape(padded_rows, LANES)

    kernel = _make_focal_loss_kernel(gamma, tile_rows, chunk_rows)

    partials = pl.pallas_call(
        kernel,
        out_shape=jax.ShapeDtypeStruct((outer, SUBLANES, LANES), jnp.float32),
        grid_spec=pltpu.PrefetchScalarGridSpec(
            num_scalar_prefetch=0,
            grid=(outer, inner),
            in_specs=[
                pl.BlockSpec((tile_rows, LANES), lambda p, k: (p * inner + k, 0)),
                pl.BlockSpec((tile_rows, LANES), lambda p, k: (p * inner + k, 0)),
            ],
            out_specs=pl.BlockSpec((1, SUBLANES, LANES), lambda p, k: (p, 0, 0)),
            scratch_shapes=[pltpu.VMEM((SUBLANES, LANES), jnp.float32)],
        ),
        compiler_params=pltpu.CompilerParams(
            dimension_semantics=("parallel", "arbitrary"),
        ),
    )(p2, a2)

    # Single cross-lane reduction + mean over the *true* element count.
    return jnp.sum(partials) * jnp.float32(1.0 / total)


def focal_loss_ref(probs, actual, gamma=1.0):
    eps = 1e-08
    p_t = jnp.where(actual == 1, probs, 1.0 - probs)
    p_t = jnp.clip(p_t, eps, 1.0)
    return jnp.mean(-jnp.power(1.0 - p_t, gamma) * jnp.log(p_t))


if __name__ == "__main__":
    key = jax.random.PRNGKey(0)
    kp, ka = jax.random.split(key)

    # Small shape consistent with an elementwise loss over e.g. NCHW maps:
    # (batch=2, channels=4, H=16, W=16) -> 2048 elements.
    shape = (2, 4, 16, 16)
    probs = jax.random.uniform(kp, shape, dtype=jnp.float32)
    actual = (jax.random.uniform(ka, shape) > 0.5).astype(jnp.float32)

    gamma = 1.0
    out = focal_loss(probs, actual, gamma=gamma)
    out = jax.block_until_ready(out)

    ref = focal_loss_ref(probs, actual, gamma=gamma)
    assert jnp.allclose(out, ref, rtol=1e-5, atol=1e-6), (out, ref)

    print("KERNEL_OK")
</pallas_src>

<mosaic_0001>
module attributes {stable_mosaic.version = 11 : i64} {
  func.func @kernel(%arg0: i32, %arg1: i32, %arg2: memref<32x128xf32, #tpu.memory_space<vmem>>, %arg3: memref<32x128xf32, #tpu.memory_space<vmem>>, %arg4: memref<1x8x128xf32, #tpu.memory_space<vmem>>, %arg5: memref<8x128xf32, #tpu.memory_space<vmem>>) attributes {dimension_semantics = [#tpu.dimension_semantics<parallel>, #tpu.dimension_semantics<arbitrary>], iteration_bounds = array<i64: 1, 1>, scalar_prefetch = 0 : i64, scratch_operands = 1 : i64, tpu.core_type = #tpu.core_type<tc>, window_params = [{transform_indices = @transform_0, window_bounds = array<i64: 32, 128>}, {transform_indices = @transform_1, window_bounds = array<i64: 32, 128>}, {transform_indices = @transform_2, window_bounds = array<i64: 1, 8, 128>}]} {
    %c0_i32 = arith.constant 0 : i32
    %0 = arith.cmpi eq, %arg1, %c0_i32 : i32
    %1 = arith.extui %0 : i1 to i32
    %c0_i32_0 = arith.constant 0 : i32
    %2 = arith.cmpi ne, %1, %c0_i32_0 : i32
    scf.if %2 {
      %cst_16 = arith.constant 0.000000e+00 : f32
      %34 = vector.broadcast %cst_16 : f32 to vector<8x128xf32>
      %c0_17 = arith.constant 0 : index
      %c0_18 = arith.constant 0 : index
      %35 = vector.load %arg5[%c0_17, %c0_18] : memref<8x128xf32, #tpu.memory_space<vmem>>, vector<8x128xf32>
      tpu.vector_store %arg5[%c0_17, %c0_18], %34 {strides = array<i32>} : memref<8x128xf32, #tpu.memory_space<vmem>>, vector<8x128xf32>,
    } else {
    }
    %cst = arith.constant 0.000000e+00 : f32
    %3 = vector.broadcast %cst : f32 to vector<8x128xf32>
    %cst_1 = arith.constant 9.99999993E-9 : f32
    %c0_i32_2 = arith.constant 0 : i32
    %c32_i32 = arith.constant 32 : i32
    %4 = arith.muli %c0_i32_2, %c32_i32 : i32
    %5 = tpu.assume_multiple %4, 32 : i32
    %6 = arith.index_cast %5 : i32 to index
    %c0 = arith.constant 0 : index
    %7 = vector.load %arg2[%6, %c0] : memref<32x128xf32, #tpu.memory_space<vmem>>, vector<32x128xf32>
    %8 = arith.index_cast %5 : i32 to index
    %c0_3 = arith.constant 0 : index
    %9 = vector.load %arg3[%8, %c0_3] : memref<32x128xf32, #tpu.memory_space<vmem>>, vector<32x128xf32>
    %cst_4 = arith.constant 1.000000e+00 : f32
    %10 = vector.broadcast %cst_4 : f32 to vector<32x128xf32>
    %11 = arith.cmpf oeq, %9, %10 : vector<32x128xf32>
    %cst_5 = arith.constant 1.000000e+00 : f32
    %12 = vector.broadcast %cst_5 : f32 to vector<32x128xf32>
    %13 = arith.subf %12, %7 : vector<32x128xf32>
    %14 = arith.select %11, %7, %13 : vector<32x128xi1>, vector<32x128xf32>
    %cst_6 = arith.constant 1.000000e+00 : f32
    %15 = vector.broadcast %cst_1 : f32 to vector<32x128xf32>
    %16 = arith.maximumf %15, %14 : vector<32x128xf32>
    %17 = vector.broadcast %cst_6 : f32 to vector<32x128xf32>
    %18 = arith.minimumf %17, %16 : vector<32x128xf32>
    %cst_7 = arith.constant 1.000000e+00 : f32
    %19 = vector.broadcast %cst_7 : f32 to vector<32x128xf32>
    %20 = arith.subf %19, %18 : vector<32x128xf32>
    %cst_8 = arith.constant 0.000000e+00 : f32
    %21 = vector.broadcast %cst_8 : f32 to vector<32x128xf32>
    %22 = arith.subf %21, %20 : vector<32x128xf32>
    %23 = math.log %18 : vector<32x128xf32>
    %24 = arith.mulf %22, %23 : vector<32x128xf32>
    %25 = vector.shape_cast %24 : vector<32x128xf32> to vector<4x8x128xf32>
    %cst_9 = arith.constant dense<0.000000e+00> : vector<8x128xf32>
    %26 = vector.multi_reduction <add>, %25, %cst_9 [0] : vector<4x8x128xf32> to vector<8x128xf32>
    %27 = arith.addf %3, %26 : vector<8x128xf32>
    %c1_i32 = arith.constant 1 : i32
    %c0_10 = arith.constant 0 : index
    %c0_11 = arith.constant 0 : index
    %28 = vector.load %arg5[%c0_10, %c0_11] : memref<8x128xf32, #tpu.memory_space<vmem>>, vector<8x128xf32>
    %29 = arith.addf %28, %27 : vector<8x128xf32>
    %c0_12 = arith.constant 0 : index
    %c0_13 = arith.constant 0 : index
    %30 = vector.load %arg5[%c0_12, %c0_13] : memref<8x128xf32, #tpu.memory_space<vmem>>, vector<8x128xf32>
    tpu.vector_store %arg5[%c0_12, %c0_13], %29 {strides = array<i32>} : memref<8x128xf32, #tpu.memory_space<vmem>>, vector<8x128xf32>,
    %c0_i32_14 = arith.constant 0 : i32
    %31 = arith.cmpi eq, %arg1, %c0_i32_14 : i32
    %32 = arith.extui %31 : i1 to i32
    %c0_i32_15 = arith.constant 0 : i32
    %33 = arith.cmpi ne, %32, %c0_i32_15 : i32
    scf.if %33 {
      %c0_16 = arith.constant 0 : index
      %c0_17 = arith.constant 0 : index
      %34 = vector.load %arg5[%c0_16, %c0_17] : memref<8x128xf32, #tpu.memory_space<vmem>>, vector<8x128xf32>
      %35 = vector.shape_cast %34 : vector<8x128xf32> to vector<1x8x128xf32>
      %c0_18 = arith.constant 0 : index
      %c0_19 = arith.constant 0 : index
      %c0_20 = arith.constant 0 : index
      %36 = vector.load %arg4[%c0_18, %c0_19, %c0_20] : memref<1x8x128xf32, #tpu.memory_space<vmem>>, vector<1x8x128xf32>
      tpu.vector_store %arg4[%c0_18, %c0_19, %c0_20], %35 {strides = array<i32>} : memref<1x8x128xf32, #tpu.memory_space<vmem>>, vector<1x8x128xf32>,
    } else {
    }
    return
  }
  func.func @transform_0(%arg0: i32, %arg1: i32) -> (i32, i32) {
    %c1_i32 = arith.constant 1 : i32
    %0 = arith.muli %arg0, %c1_i32 : i32
    %1 = arith.addi %0, %arg1 : i32
    %c0_i32 = arith.constant 0 : i32
    %c0_i32_0 = arith.constant 0 : i32
    return %1, %c0_i32 : i32, i32
  }
  func.func @transform_1(%arg0: i32, %arg1: i32) -> (i32, i32) {
    %c1_i32 = arith.constant 1 : i32
    %0 = arith.muli %arg0, %c1_i32 : i32
    %1 = arith.addi %0, %arg1 : i32
    %c0_i32 = arith.constant 0 : i32
    %c0_i32_0 = arith.constant 0 : i32
    return %1, %c0_i32 : i32, i32
  }
  func.func @transform_2(%arg0: i32, %arg1: i32) -> (i32, i32, i32) {
    %c0_i32 = arith.constant 0 : i32
    %c0_i32_0 = arith.constant 0 : i32
    %c0_i32_1 = arith.constant 0 : i32
    return %arg0, %c0_i32, %c0_i32_0 : i32, i32, i32
  }
}

</mosaic_0001>

<bundles_post_ra>
// kernel: tpu_custom_call.1
= control target key start
LH: loop header
LB: loop body
LE: loop exit
PB: predicated region body
PF: predicated region fallthrough
CT: control target
= control target key end

     0   :  { %7 = vsyncpa [#allocation4], 0  ;;  %s274_s0 = inlined_call_operand.hbm [shape: f32[32,128], index: 0, kind: input, shape index: {}]   ;;  %s275_s1 = inlined_call_operand.hbm [shape: f32[32,128], index: 1, kind: input, shape index: {}]   ;;  %s276_s2 = inlined_call_operand.hbm [shape: f32[1,8,128], index: 2, kind: output, shape index: {}]  }
   0x1   :  { %8 = vsyncpa [#allocation7], 0 }
   0x2   :  { %9 = vsyncpa [#allocation5], 0  ;;  %s218_s9 = smov [#allocation3]   ;;  %s146_s13 = scalar_lea.hbm %s274_s0, 512 }
   0x3   :  { %s19_s10 = sshll.u32 %s218_s9, 4  ;;  %p147_p0 = scmp.ne.s32.totalorder %s274_s0, %s146_s13  ;;  %s20_s10 = int_to_ptr.vmem [resolvable:$true] %s19_s10 }
   0x4   :  { %p150_p1 = scmp.lt.u32.totalorder %s146_s13, %s274_s0 }
   0x6   :  { %p152_p2 = pnand %p150_p1, %p147_p0 }
   0x8   :  { %155 = shalt.err (!%p152_p2)
}
   0x9   :  { %s156_s18 = scalar_lea.vmem %s20_s10, 512  ;;  %p161_p4 = scmp.lt.s32.totalorder %s20_s10, %s20_s10 }
   0xa   :  { %p157_p3 = scmp.ne.s32.totalorder %s20_s10, %s156_s18  ;;  %p162_p5 = scmp.lt.s32.totalorder %s156_s18, %s156_s18 }
   0xc   :  { %p163_p6 = por %p162_p5, %p161_p4 }
   0xe   :  { %p164_p7 = pnand %p163_p6, %p157_p3 }
  0x10   :  { %167 = shalt.err (!%p164_p7)
}
  0x11   :  { %s219_s19 = smov 128   ;;  %s220_s20 = smov 8  }
  0x12   :  { %25 = dma.hbm_to_vmem [thread:$0]  %s274_s0, 512, %s20_s10, [#allocation4], %s219_s19, %s219_s19, %s220_s20  }
  0x13   :  { %s221_s23 = smov [#allocation6]   ;;  %s168_s27 = scalar_lea.hbm %s275_s1, 512 }
  0x14   :  { %s35_s24 = sshll.u32 %s221_s23, 4  ;;  %p169_p8 = scmp.ne.s32.totalorder %s275_s1, %s168_s27  ;;  %s36_s24 = int_to_ptr.vmem [resolvable:$true] %s35_s24 }
  0x15   :  { %p172_p9 = scmp.lt.u32.totalorder %s168_s27, %s275_s1 }
  0x17   :  { %p174_p10 = pnand %p172_p9, %p169_p8 }
  0x19   :  { %177 = shalt.err (!%p174_p10)
}
  0x1a   :  { %s178_s4 = scalar_lea.vmem %s36_s24, 512  ;;  %p183_p12 = scmp.lt.s32.totalorder %s36_s24, %s36_s24 }
  0x1b   :  { %p179_p11 = scmp.ne.s32.totalorder %s36_s24, %s178_s4  ;;  %p184_p13 = scmp.lt.s32.totalorder %s178_s4, %s178_s4 }
  0x1d   :  { %p185_p0 = por %p184_p13, %p183_p12 }
  0x1f   :  { %p186_p1 = pnand %p185_p0, %p179_p11 }
  0x21   :  { %189 = shalt.err (!%p186_p1)
}
  0x22   :  { %41 = dma.hbm_to_vmem [thread:$0]  %s275_s1, 512, %s36_s24, [#allocation7], %s219_s19, %s219_s19, %s220_s20  }
  0x23   :  { %212 = dma.done.wait [#allocation4], 512  }
  0x24   :  { %213 = vsyncadd [#allocation4], 4294966784 }
  0x25   :  { %214 = dma.done.wait [#allocation7], 512  }
  0x26   :  { %215 = vsyncadd [#allocation7], 4294966784  ;;  %v57_v0 = vld [vmem:[#allocation3] sm:$0xff]  ;;  %v58_v1 = vld [vmem:[#allocation3 + $0x8] sm:$0xff]  ;;  %s222_s1 = smov [#allocation8]  }
  0x27   :  { %v59_v2 = vld [vmem:[#allocation3 + $0x10] sm:$0xff]  ;;  %v60_v3 = vld [vmem:[#allocation3 + $0x18] sm:$0xff]  ;;  %v61_v4 = vld [vmem:[#allocation6] sm:$0xff]  ;;  %v69_v6 = vsub.f32 1.0, %v57_v0  ;;  %v70_v7 = vsub.f32 1.0, %v58_v1  ;;  %s123_s6 = sshll.u32 %s222_s1, 4  ;;  %s124_s6 = int_to_ptr.vmem [resolvable:$true] %s123_s6 }
  0x28   :  { %v62_v5 = vld [vmem:[#allocation6 + $0x8] sm:$0xff]  ;;  %v71_v8 = vsub.f32 1.0, %v59_v2  ;;  %v63_v9 = vld [vmem:[#allocation6 + $0x10] sm:$0xff]  ;;  %v64_v10 = vld [vmem:[#allocation6 + $0x18] sm:$0xff]  ;;  %vm65_vm0 = vcmp.eq.f32.partialorder %v61_v4, 1.0  ;;  %v72_v11 = vsub.f32 1.0, %v60_v3  ;;  %p195_p3 = scmp.lt.s32.totalorder %s124_s6, %s124_s6 }
  0x29   :  { %vm66_vm1 = vcmp.eq.f32.partialorder %v62_v5, 1.0  ;;  %vm67_vm2 = vcmp.eq.f32.partialorder %v63_v9, 1.0  ;;  %vm68_vm3 = vcmp.eq.f32.partialorder %v64_v10, 1.0  ;;  %v73_v12 = vsel %vm65_vm0, %v57_v0, %v69_v6  ;;  %s190_s7 = scalar_lea.vmem %s124_s6, 128 }
  0x2a   :  { %v74_v13 = vsel %vm66_vm1, %v58_v1, %v70_v7  ;;  %v75_v14 = vsel %vm67_vm2, %v59_v2, %v71_v8  ;;  %v76_v15 = vsel %vm68_vm3, %v60_v3, %v72_v11  ;;  %v77_v16 = vmax.f32 %v73_v12, 1e-08  ;;  %p191_p2 = scmp.ne.s32.totalorder %s124_s6, %s190_s7  ;;  %p196_p4 = scmp.lt.s32.totalorder %s190_s7, %s190_s7 }
  0x2b   :  { %v78_v17 = vmax.f32 %v74_v13, 1e-08  ;;  %v79_v18 = vmax.f32 %v75_v14, 1e-08  ;;  %v80_v19 = vmax.f32 %v76_v15, 1e-08 }
  0x2c   :  { %v81_v20 = vmin.f32 %v77_v16, 1.0  ;;  %p197_p5 = por %p196_p4, %p195_p3 }
  0x2d   :  { %v82_v21 = vmin.f32 %v78_v17, 1.0  ;;  %v83_v22 = vmin.f32 %v79_v18, 1.0  ;;  %v84_v23 = vmin.f32 %v80_v19, 1.0 }
  0x2e   :  { %138 = vlog2.f32 %v81_v20  ;;  %v85_v24 = vsub.f32 1.0, %v81_v20  ;;  %p198_p6 = pnand %p197_p5, %p191_p2 }
  0x2f   :  { %140 = vlog2.f32 %v82_v21  ;;  %v86_v25 = vsub.f32 1.0, %v82_v21  ;;  %v87_v26 = vsub.f32 1.0, %v83_v22  ;;  %v88_v27 = vsub.f32 1.0, %v84_v23 }
  0x30   :  { %142 = vlog2.f32 %v83_v22  ;;  %v89_v28 = vsub.f32 0.0, %v85_v24 }
  0x31   :  { %144 = vlog2.f32 %v84_v23  ;;  %v90_v30 = vsub.f32 0.0, %v86_v25  ;;  %v91_v32 = vsub.f32 0.0, %v87_v26  ;;  %v92_v35 = vsub.f32 0.0, %v88_v27 }
  0x38   :  { %v139_v29 = vpop.eup %138 }
  0x39   :  { %v141_v31 = vpop.eup %140  ;;  %v94_v33 = vmul.f32 0.6931472, %v139_v29 }
  0x3a   :  { %v143_v34 = vpop.eup %142  ;;  %v96_v36 = vmul.f32 0.6931472, %v141_v31 }
  0x3b   :  { %v145_v37 = vpop.eup %144  ;;  %v98_v38 = vmul.f32 0.6931472, %v143_v34  ;;  %v101_v39 = vmul.f32 %v94_v33, %v89_v28 }
  0x3c   :  { %v100_v40 = vmul.f32 0.6931472, %v145_v37  ;;  %v102_v41 = vmul.f32 %v96_v36, %v90_v30 }
  0x3d   :  { %v103_v42 = vmul.f32 %v98_v38, %v91_v32 }
  0x3e   :  { %v104_v43 = vmul.f32 %v100_v40, %v92_v35  ;;  %v105_v44 = vadd.f32 %v102_v41, %v101_v39 }
  0x40   :  { %v106_v45 = vadd.f32 %v105_v44, %v103_v42 }
  0x42   :  { %v107_v46 = vadd.f32 %v106_v45, %v104_v43 }
  0x44   :  { %116 = vst [vmem:[#allocation8] sm:$0xff] %v107_v46 }
  0x45   :  { %201 = shalt.err (!%p198_p6)
}
  0x46   :  { %s202_s10 = scalar_lea.hbm %s276_s2, 128 }
  0x47   :  { %p203_p7 = scmp.ne.s32.totalorder %s276_s2, %s202_s10  ;;  %p206_p8 = scmp.lt.u32.totalorder %s202_s10, %s276_s2 }
  0x49   :  { %p208_p9 = pnand %p206_p8, %p203_p7 }
  0x4b   :  { %211 = shalt.err (!%p208_p9)
}
  0x4c   :  { %126 = dma.vmem_to_hbm [thread:$0]  %s124_s6, 128, %s276_s2, [#allocation5]  }
  0x4d   :  { %216 = dma.done.wait [#allocation5], 128  }
  0x4e   :  { %217 = vsyncadd [#allocation5], 4294967168 }
  0x4f   :  { %130 = vsyncpa [#allocation4], 1 }
  0x50   :  { %131 = vsyncpa [#allocation7], 1 }
  0x51   :  { %132 = vsyncpa [#allocation5], 1 }

</bundles_post_ra>
